<compile_context>
chip_gen: v6e
topology: v6e:2x2x1
jax: 0.10.0
libtpu: 0.0.40
codegen_flags: <defaults>
</compile_context>

<pallas_src>
import jax
import jax.numpy as jnp
from jax.experimental import pallas as pl
from jax.experimental.pallas import tpu as pltpu

_LANES = 128
# (1024, 128) f32 in + int32 out = 1 MiB per step, 2 MiB double-buffered.
_MAX_TILE_ROWS = 1024


def _to_binary_label_kernel(thr_ref, x_ref, o_ref):
    # Elementwise thresholding on the VPU: 1 where score > threshold else 0.
    thr = thr_ref[0]
    o_ref[...] = (x_ref[...] > thr).astype(o_ref.dtype)


def to_binary_label(scores: jax.Array, threshold=0.0) -> jax.Array:
    """Compute binary labels from float scores by thresholding.

    Args:
        scores: float array of any shape (d0, d1, ..., dn).
        threshold: scalar threshold (Python float or traced JAX scalar).

    Returns:
        int32 array of the same shape with values in {0, 1}.
    """
    orig_shape = scores.shape
    flat = scores.reshape(-1)
    n = flat.shape[0]
    if n == 0:
        return jnp.zeros(orig_shape, dtype=jnp.int32)

    # Pad only to a whole number of 128-lane rows (not a whole tile).  For
    # lane-aligned inputs (the common case) this is a no-op; otherwise at most
    # 127 elements are padded.  Padded lanes are sliced off before returning,
    # so their label value is irrelevant (strict '>' would map 0-padding to 0
    # anyway for threshold >= 0).
    n_pad = ((n + _LANES - 1) // _LANES) * _LANES
    padded = n_pad != n
    if padded:
        flat = jnp.pad(flat, (0, n_pad - n))

    rows = n_pad // _LANES
    x2d = flat.reshape(rows, _LANES)

    # Block rows: full extent when small (matches the array dim exactly, which
    # always satisfies the (8,128) block rule), otherwise a large multiple of 8
    # so the fixed per-grid-step overhead is amortized over ~1 MiB of traffic.
    tile_rows = rows if rows <= _MAX_TILE_ROWS else _MAX_TILE_ROWS
    grid = (pl.cdiv(rows, tile_rows),)

    thr_arr = jnp.asarray(threshold, dtype=jnp.float32).reshape((1,))

    out2d = pl.pallas_call(
        _to_binary_label_kernel,
        out_shape=jax.ShapeDtypeStruct((rows, _LANES), jnp.int32),
        grid=grid,
        in_specs=[
            # Threshold scalar lives in SMEM for the whole call.
            pl.BlockSpec(memory_space=pltpu.MemorySpace.SMEM),
            pl.BlockSpec((tile_rows, _LANES), lambda i: (i, 0)),
        ],
        out_specs=pl.BlockSpec((tile_rows, _LANES), lambda i: (i, 0)),
        compiler_params=pltpu.CompilerParams(
            dimension_semantics=("parallel",)),
    )(thr_arr, x2d)

    out_flat = out2d.reshape(-1)
    if padded:
        out_flat = out_flat[:n]
    return out_flat.reshape(orig_shape)


if __name__ == "__main__":
    key = jax.random.PRNGKey(0)

    # Small 4-D scores tensor, e.g. (batch, channels, H, W) = (2, 4, 16, 16).
    x = jax.random.normal(key, (2, 4, 16, 16), dtype=jnp.float32)

    threshold = 0.0
    out = to_binary_label(x, threshold=threshold)
    out = jax.block_until_ready(out)

    # Reference check against plain JAX semantics of (scores > threshold).long().
    ref = (x > threshold).astype(jnp.int32)
    assert out.shape == x.shape
    assert out.dtype == jnp.int32
    assert bool(jnp.all(out == ref))

    # 1-D doc example (exercises the lane-padding path):
    # [-1, 1, -2, 1] -> [0, 1, 0, 1]
    doc = to_binary_label(jnp.array([-1.0, 1.0, -2.0, 1.0], dtype=jnp.float32))
    doc = jax.block_until_ready(doc)
    assert bool(jnp.all(doc == jnp.array([0, 1, 0, 1], dtype=jnp.int32)))

    # Larger, non-tile-multiple input (exercises the multi-step grid with a
    # partial last block) and a non-zero runtime threshold.
    key2 = jax.random.PRNGKey(1)
    y = jax.random.normal(key2, (1100, 128), dtype=jnp.float32)
    out2 = jax.block_until_ready(to_binary_label(y, threshold=0.25))
    ref2 = (y > 0.25).astype(jnp.int32)
    assert bool(jnp.all(out2 == ref2))

    print("KERNEL_OK")
</pallas_src>

<mosaic_0001>
module attributes {stable_mosaic.version = 11 : i64} {
  func.func @_to_binary_label_kernel(%arg0: i32, %arg1: memref<1xf32, #tpu.memory_space<smem>>, %arg2: memref<16x128xf32, #tpu.memory_space<vmem>>, %arg3: memref<16x128xi32, #tpu.memory_space<vmem>>) attributes {dimension_semantics = [#tpu.dimension_semantics<parallel>], iteration_bounds = array<i64: 1>, scalar_prefetch = 0 : i64, scratch_operands = 0 : i64, tpu.core_type = #tpu.core_type<tc>, window_params = [{transform_indices = @transform_0, window_bounds = array<i64: 1>}, {transform_indices = @transform_1, window_bounds = array<i64: 16, 128>}, {transform_indices = @transform_2, window_bounds = array<i64: 16, 128>}]} {
    %c0 = arith.constant 0 : index
    %0 = memref.load %arg1[%c0] : memref<1xf32, #tpu.memory_space<smem>>
    %c0_0 = arith.constant 0 : index
    %c0_1 = arith.constant 0 : index
    %1 = vector.load %arg2[%c0_0, %c0_1] : memref<16x128xf32, #tpu.memory_space<vmem>>, vector<16x128xf32>
    %2 = vector.broadcast %0 : f32 to vector<16x128xf32>
    %3 = arith.cmpf ogt, %1, %2 : vector<16x128xf32>
    %4 = arith.extui %3 : vector<16x128xi1> to vector<16x128xi32>
    %c0_2 = arith.constant 0 : index
    %c0_3 = arith.constant 0 : index
    %5 = vector.load %arg3[%c0_2, %c0_3] : memref<16x128xi32, #tpu.memory_space<vmem>>, vector<16x128xi32>
    tpu.vector_store %arg3[%c0_2, %c0_3], %4 {strides = array<i32>} : memref<16x128xi32, #tpu.memory_space<vmem>>, vector<16x128xi32>,
    return
  }
  func.func @transform_0(%arg0: i32) -> i32 {
    %c0_i32 = arith.constant 0 : i32
    %c0_i32_0 = arith.constant 0 : i32
    return %c0_i32 : i32
  }
  func.func @transform_1(%arg0: i32) -> (i32, i32) {
    %c0_i32 = arith.constant 0 : i32
    %c0_i32_0 = arith.constant 0 : i32
    return %arg0, %c0_i32 : i32, i32
  }
  func.func @transform_2(%arg0: i32) -> (i32, i32) {
    %c0_i32 = arith.constant 0 : i32
    %c0_i32_0 = arith.constant 0 : i32
    return %arg0, %c0_i32 : i32, i32
  }
}

</mosaic_0001>

<bundles_post_ra>
// kernel: tpu_custom_call.1
= control target key start
LH: loop header
LB: loop body
LE: loop exit
PB: predicated region body
PF: predicated region fallthrough
CT: control target
= control target key end

     0   :  { %8 = vsyncpa [#allocation4], 0  ;;  %s132_s0 = inlined_call_operand.<no memory space> [shape: f32[1], index: 0, kind: input, shape index: {}]   ;;  %s133_s1 = inlined_call_operand.hbm [shape: f32[16,128], index: 1, kind: input, shape index: {}]   ;;  %s134_s2 = inlined_call_operand.hbm [shape: s32[16,128], index: 2, kind: output, shape index: {}]  }
   0x1   :  { %9 = vsyncpa [#allocation5], 0  ;;  %s103_s9 = smov [#allocation3]  }
   0x2   :  { %s17_s10 = sshll.u32 %s103_s9, 4  ;;  %s18_s10 = int_to_ptr.vmem [resolvable:$true] %s17_s10 }
   0x3   :  { %s67_s11 = scalar_lea.vmem %s18_s10, 256  ;;  %p72_p1 = scmp.lt.s32.totalorder %s18_s10, %s18_s10 }
   0x4   :  { %p68_p0 = scmp.ne.s32.totalorder %s18_s10, %s67_s11  ;;  %p73_p2 = scmp.lt.s32.totalorder %s67_s11, %s67_s11 }
   0x6   :  { %p74_p3 = por %p73_p2, %p72_p1 }
   0x8   :  { %p75_p4 = pnand %p74_p3, %p68_p0 }
   0xa   :  { %78 = shalt.err (!%p75_p4)
}
   0xb   :  { %s104_s12 = smov 128   ;;  %s105_s13 = smov 8  }
   0xc   :  { %23 = dma.hbm_to_vmem [thread:$0]  %s133_s1, 256, %s18_s10, [#allocation4], %s104_s12, %s104_s12, %s105_s13  }
   0xd   :  { %99 = dma.done.wait [#allocation4], 256  }
   0xe   :  { %100 = vsyncadd [#allocation4], 4294967040  ;;  %v30_v0 = vstv %s132_s0  ;;  %s106_s18 = smov [#allocation6]   ;;  %v28_v1 = vld [vmem:[#allocation3] sm:$0xff]  ;;  %v29_v2 = vld [vmem:[#allocation3 + $0x8] sm:$0xff]  ;;  %v107_v3 = vmov 0  }
   0xf   :  { %s42_s19 = sshll.u32 %s106_s18, 4  ;;  %vm31_vm0 = vcmp.gt.f32.partialorder %v28_v1, %v30_v0  ;;  %vm32_vm1 = vcmp.gt.f32.partialorder %v29_v2, %v30_v0  ;;  %s43_s19 = int_to_ptr.vmem [resolvable:$true] %s42_s19 }
  0x10   :  { %v33_v4 = vsel %vm31_vm0, 1, %v107_v3  ;;  %v34_v5 = vsel %vm32_vm1, 1, %v107_v3  ;;  %s79_s20 = scalar_lea.vmem %s43_s19, 256  ;;  %p84_p6 = scmp.lt.s32.totalorder %s43_s19, %s43_s19 }
  0x11   :  { %35 = vst [vmem:[#allocation6] sm:$0xff] %v33_v4  ;;  %36 = vst [vmem:[#allocation6 + $0x8] sm:$0xff] %v34_v5  ;;  %p80_p5 = scmp.ne.s32.totalorder %s43_s19, %s79_s20  ;;  %p85_p7 = scmp.lt.s32.totalorder %s79_s20, %s79_s20 }
  0x13   :  { %p86_p8 = por %p85_p7, %p84_p6 }
  0x15   :  { %p87_p9 = pnand %p86_p8, %p80_p5 }
  0x17   :  { %90 = shalt.err (!%p87_p9)
}
  0x18   :  { %48 = dma.vmem_to_hbm [thread:$0]  %s43_s19, 256, %s134_s2, [#allocation5], %s104_s12, %s104_s12, %s105_s13  }
  0x19   :  { %101 = dma.done.wait [#allocation5], 256  }
  0x1a   :  { %102 = vsyncadd [#allocation5], 4294967040 }
  0x1b   :  { %52 = vsyncpa [#allocation4], 1 }
  0x1c   :  { %53 = vsyncpa [#allocation5], 1 }

</bundles_post_ra>
